<compile_context>
chip_gen: v7x
topology: tpu7x:2x2x1
jax: 0.10.0
libtpu: 0.0.40
codegen_flags: <defaults>
</compile_context>

<pallas_src>
import jax
import jax.numpy as jnp
from jax.experimental import pallas as pl
from jax.experimental.pallas import tpu as pltpu


HIDDEN = 16
C_IN = 3

_SQRT1_2 = 0.7071067811865476


def _gelu_exact_erf_exp(x):
    """Exact (erf) GELU with erf via Abramowitz-Stegun 7.1.26.

    One EUP exp + ~10 VPU ops per element; |erf error| <= 1.5e-7, so the GELU
    matches the exact-erf reference well inside 1e-5 after the downstream
    conv2 + 0.05*tanh scaling.
    """
    z = jnp.abs(x) * _SQRT1_2
    t = 1.0 / (1.0 + 0.3275911 * z)
    poly = t * (0.254829592 + t * (-0.284496736 + t * (1.421413741
                + t * (-1.453152027 + t * 1.061405429))))
    erf_abs = 1.0 - poly * jnp.exp(-(z * z))
    erf = jnp.where(x < 0.0, -erf_abs, erf_abs)
    return 0.5 * x * (1.0 + erf)


def _refine_kernel(x_ref, w1_ref, b1_ref, w2_ref, b2_ref, o_ref):
    # x_ref / o_ref: (B_TILE, 3, L_TILE) tiles in native NCL layout
    # (positions on lanes, channels on sublanes).
    w1 = w1_ref[...].astype(jnp.float32)               # (H, 3)
    b1 = b1_ref[...].astype(jnp.float32)               # (H, 1)
    w2 = w2_ref[...].astype(jnp.float32)               # (3, H)
    b2 = b2_ref[...].astype(jnp.float32)               # (3, 1)
    w1_cols = [w1[:, c:c + 1] for c in range(C_IN)]    # hoisted (H, 1) columns

    b_tile = x_ref.shape[0]
    for i in range(b_tile):                            # small, unrolled at trace
        x = x_ref[i].astype(jnp.float32)               # (3, L_TILE)

        # conv1 (1x1, 3->H) as VPU splat-FMAs: h = W1 @ x + b1.
        h = b1 + w1_cols[0] * x[0:1, :]
        for c in range(1, C_IN):
            h = h + w1_cols[c] * x[c:c + 1, :]         # (H, L_TILE)
        h = _gelu_exact_erf_exp(h)

        # conv2 (1x1, H->3) on the MXU: d = W2 @ h + b2.
        d = jnp.dot(w2, h, preferred_element_type=jnp.float32) + b2
        delta = jnp.tanh(d) * 0.05                     # (3, L_TILE)

        o_ref[i] = jnp.clip(x + delta, 0.0, 1.0).astype(o_ref.dtype)


def _cdiv(a, b):
    return -(-a // b)


def refine_net_pallas(c, w1, b1, w2, b2, *, l_tile_max=16384, b_tile_max=8,
                      min_grid_steps=8):
    """c: (B, 3, L) f32; w1: (H, 3); b1: (H,); w2: (3, H); b2: (3,) -> (B, 3, L).

    Weight layouts match nn.Conv1d(kernel_size=1) weights with the trailing
    kernel dim squeezed: conv1.weight (H,3,1)->(H,3), conv2.weight (3,H,1)->(3,H).
    """
    B, c_in, L = c.shape
    assert c_in == C_IN
    hidden = w1.shape[0]

    # Lane-dense position tile; ragged last tiles are masked by Pallas, so no
    # host-side pad/slice HBM passes are needed.
    if L % 128 == 0:
        l_tile = min(l_tile_max, L)
    elif L <= l_tile_max:
        l_tile = L            # full-dim block (exempt from 128-divisibility)
    else:
        l_tile = l_tile_max   # multiple of 128; last tile is partial / masked
    n_l = _cdiv(L, l_tile)

    # Block several batch rows per grid step when L is small (amortize the
    # fixed per-step pipeline cost), but keep at least `min_grid_steps` steps
    # so megacore / dual-TC chips stay busy.
    b_tile = 1
    while (b_tile * 2 <= min(B, b_tile_max)
           and b_tile * 2 * l_tile <= 16384
           and _cdiv(B, b_tile * 2) * n_l >= min_grid_steps):
        b_tile *= 2
    n_b = _cdiv(B, b_tile)

    b1_col = b1.reshape(hidden, 1)
    b2_col = b2.reshape(C_IN, 1)

    return pl.pallas_call(
        _refine_kernel,
        out_shape=jax.ShapeDtypeStruct((B, C_IN, L), c.dtype),
        grid_spec=pltpu.PrefetchScalarGridSpec(
            num_scalar_prefetch=0,
            grid=(n_b, n_l),
            in_specs=[
                pl.BlockSpec((b_tile, C_IN, l_tile), lambda bi, li: (bi, 0, li)),
                pl.BlockSpec((hidden, C_IN), lambda bi, li: (0, 0)),   # W1
                pl.BlockSpec((hidden, 1), lambda bi, li: (0, 0)),      # b1
                pl.BlockSpec((C_IN, hidden), lambda bi, li: (0, 0)),   # W2
                pl.BlockSpec((C_IN, 1), lambda bi, li: (0, 0)),        # b2
            ],
            out_specs=pl.BlockSpec((b_tile, C_IN, l_tile),
                                   lambda bi, li: (bi, 0, li)),
        ),
        compiler_params=pltpu.CompilerParams(
            dimension_semantics=("parallel", "parallel"),
            vmem_limit_bytes=32 * 1024 * 1024,
        ),
    )(c, w1, b1_col, w2, b2_col)


def _reference(c, w1, b1, w2, b2):
    # Pure-JAX reference of the PyTorch forward (exact-erf GELU).
    h = jnp.einsum("hc,bcl->bhl", w1, c) + b1[None, :, None]
    h = jax.nn.gelu(h, approximate=False)
    d = jnp.einsum("ch,bhl->bcl", w2, h) + b2[None, :, None]
    return jnp.clip(c + jnp.tanh(d) * 0.05, 0.0, 1.0)


if __name__ == "__main__":
    key = jax.random.PRNGKey(0)
    k_c, k_w1, k_b1, k_w2, k_b2 = jax.random.split(key, 5)

    B, L = 2, 1000   # L deliberately not a multiple of 128
    c = jax.random.uniform(k_c, (B, C_IN, L), dtype=jnp.float32)

    # Deterministic synthetic parameters in native PyTorch conv layout
    # (kernel dim squeezed): W1 (H, 3), W2 (3, H).
    w1 = jax.random.normal(k_w1, (HIDDEN, C_IN), dtype=jnp.float32) * 0.2
    b1 = jax.random.normal(k_b1, (HIDDEN,), dtype=jnp.float32) * 0.1
    w2 = jax.random.normal(k_w2, (C_IN, HIDDEN), dtype=jnp.float32) * 0.2
    b2 = jax.random.normal(k_b2, (C_IN,), dtype=jnp.float32) * 0.1

    ref = _reference(c, w1, b1, w2, b2)

    # Default tiling: one full-length lane-dense tile per batch row.
    out = jax.block_until_ready(refine_net_pallas(c, w1, b1, w2, b2))
    assert out.shape == (B, C_IN, L)
    assert jnp.allclose(out, ref, atol=1e-5, rtol=1e-5), "mismatch (default tiling)"

    # Small tile: exercises the ragged last position tile (no host pad/slice).
    out2 = jax.block_until_ready(
        refine_net_pallas(c, w1, b1, w2, b2, l_tile_max=256))
    assert jnp.allclose(out2, ref, atol=1e-5, rtol=1e-5), "mismatch (ragged tiling)"

    print("KERNEL_OK")
</pallas_src>

<mosaic_0001>
module attributes {stable_mosaic.version = 11 : i64} {
  func.func @_refine_kernel(%arg0: i32, %arg1: i32, %arg2: memref<1x3x1000xf32, #tpu.memory_space<vmem>>, %arg3: memref<16x3xf32, #tpu.memory_space<vmem>>, %arg4: memref<16x1xf32, #tpu.memory_space<vmem>>, %arg5: memref<3x16xf32, #tpu.memory_space<vmem>>, %arg6: memref<3x1xf32, #tpu.memory_space<vmem>>, %arg7: memref<1x3x1000xf32, #tpu.memory_space<vmem>>) attributes {dimension_semantics = [#tpu.dimension_semantics<parallel>, #tpu.dimension_semantics<parallel>], iteration_bounds = array<i64: 2, 1>, scalar_prefetch = 0 : i64, scratch_operands = 0 : i64, tpu.core_type = #tpu.core_type<tc>, window_params = [{transform_indices = @transform_0, window_bounds = array<i64: 1, 3, 1000>}, {pipeline_mode = #tpu.pipeline_mode<synchronous>, transform_indices = @transform_1, window_bounds = array<i64: 16, 3>}, {pipeline_mode = #tpu.pipeline_mode<synchronous>, transform_indices = @transform_2, window_bounds = array<i64: 16, 1>}, {pipeline_mode = #tpu.pipeline_mode<synchronous>, transform_indices = @transform_3, window_bounds = array<i64: 3, 16>}, {pipeline_mode = #tpu.pipeline_mode<synchronous>, transform_indices = @transform_4, window_bounds = array<i64: 3, 1>}, {transform_indices = @transform_5, window_bounds = array<i64: 1, 3, 1000>}]} {
    %c0 = arith.constant 0 : index
    %c0_0 = arith.constant 0 : index
    %0 = vector.load %arg3[%c0, %c0_0] : memref<16x3xf32, #tpu.memory_space<vmem>>, vector<16x3xf32>
    %c0_1 = arith.constant 0 : index
    %c0_2 = arith.constant 0 : index
    %1 = vector.load %arg4[%c0_1, %c0_2] : memref<16x1xf32, #tpu.memory_space<vmem>>, vector<16x1xf32>
    %c0_3 = arith.constant 0 : index
    %c0_4 = arith.constant 0 : index
    %2 = vector.load %arg5[%c0_3, %c0_4] : memref<3x16xf32, #tpu.memory_space<vmem>>, vector<3x16xf32>
    %c0_5 = arith.constant 0 : index
    %c0_6 = arith.constant 0 : index
    %3 = vector.load %arg6[%c0_5, %c0_6] : memref<3x1xf32, #tpu.memory_space<vmem>>, vector<3x1xf32>
    %4 = vector.extract_strided_slice %0 {offsets = [0, 0], sizes = [16, 1], strides = [1, 1]} : vector<16x3xf32> to vector<16x1xf32>
    %5 = vector.extract_strided_slice %0 {offsets = [0, 1], sizes = [16, 1], strides = [1, 1]} : vector<16x3xf32> to vector<16x1xf32>
    %6 = vector.extract_strided_slice %0 {offsets = [0, 2], sizes = [16, 1], strides = [1, 1]} : vector<16x3xf32> to vector<16x1xf32>
    %c0_7 = arith.constant 0 : index
    %c0_8 = arith.constant 0 : index
    %c0_9 = arith.constant 0 : index
    %7 = vector.load %arg2[%c0_7, %c0_8, %c0_9] : memref<1x3x1000xf32, #tpu.memory_space<vmem>>, vector<1x3x1000xf32>
    %8 = vector.shape_cast %7 : vector<1x3x1000xf32> to vector<3x1000xf32>
    %9 = vector.extract_strided_slice %8 {offsets = [0, 0], sizes = [1, 1000], strides = [1, 1]} : vector<3x1000xf32> to vector<1x1000xf32>
    %10 = vector.broadcast %4 : vector<16x1xf32> to vector<16x1000xf32>
    %11 = vector.broadcast %9 : vector<1x1000xf32> to vector<16x1000xf32>
    %12 = arith.mulf %10, %11 : vector<16x1000xf32>
    %13 = vector.broadcast %1 : vector<16x1xf32> to vector<16x1000xf32>
    %14 = arith.addf %13, %12 : vector<16x1000xf32>
    %15 = vector.extract_strided_slice %8 {offsets = [1, 0], sizes = [1, 1000], strides = [1, 1]} : vector<3x1000xf32> to vector<1x1000xf32>
    %16 = vector.broadcast %5 : vector<16x1xf32> to vector<16x1000xf32>
    %17 = vector.broadcast %15 : vector<1x1000xf32> to vector<16x1000xf32>
    %18 = arith.mulf %16, %17 : vector<16x1000xf32>
    %19 = arith.addf %14, %18 : vector<16x1000xf32>
    %20 = vector.extract_strided_slice %8 {offsets = [2, 0], sizes = [1, 1000], strides = [1, 1]} : vector<3x1000xf32> to vector<1x1000xf32>
    %21 = vector.broadcast %6 : vector<16x1xf32> to vector<16x1000xf32>
    %22 = vector.broadcast %20 : vector<1x1000xf32> to vector<16x1000xf32>
    %23 = arith.mulf %21, %22 : vector<16x1000xf32>
    %24 = arith.addf %19, %23 : vector<16x1000xf32>
    %25 = math.absf %24 : vector<16x1000xf32>
    %cst = arith.constant 0.707106769 : f32
    %26 = vector.broadcast %cst : f32 to vector<16x1000xf32>
    %27 = arith.mulf %25, %26 : vector<16x1000xf32>
    %cst_10 = arith.constant 0.327591091 : f32
    %28 = vector.broadcast %cst_10 : f32 to vector<16x1000xf32>
    %29 = arith.mulf %28, %27 : vector<16x1000xf32>
    %cst_11 = arith.constant 1.000000e+00 : f32
    %30 = vector.broadcast %cst_11 : f32 to vector<16x1000xf32>
    %31 = arith.addf %30, %29 : vector<16x1000xf32>
    %cst_12 = arith.constant 1.000000e+00 : f32
    %32 = vector.broadcast %cst_12 : f32 to vector<16x1000xf32>
    %33 = arith.divf %32, %31 : vector<16x1000xf32>
    %cst_13 = arith.constant 1.06140542 : f32
    %34 = vector.broadcast %cst_13 : f32 to vector<16x1000xf32>
    %35 = arith.mulf %33, %34 : vector<16x1000xf32>
    %cst_14 = arith.constant -1.45315206 : f32
    %36 = vector.broadcast %cst_14 : f32 to vector<16x1000xf32>
    %37 = arith.addf %36, %35 : vector<16x1000xf32>
    %38 = arith.mulf %33, %37 : vector<16x1000xf32>
    %cst_15 = arith.constant 1.42141378 : f32
    %39 = vector.broadcast %cst_15 : f32 to vector<16x1000xf32>
    %40 = arith.addf %39, %38 : vector<16x1000xf32>
    %41 = arith.mulf %33, %40 : vector<16x1000xf32>
    %cst_16 = arith.constant -0.284496725 : f32
    %42 = vector.broadcast %cst_16 : f32 to vector<16x1000xf32>
    %43 = arith.addf %42, %41 : vector<16x1000xf32>
    %44 = arith.mulf %33, %43 : vector<16x1000xf32>
    %cst_17 = arith.constant 0.254829586 : f32
    %45 = vector.broadcast %cst_17 : f32 to vector<16x1000xf32>
    %46 = arith.addf %45, %44 : vector<16x1000xf32>
    %47 = arith.mulf %33, %46 : vector<16x1000xf32>
    %48 = arith.mulf %27, %27 : vector<16x1000xf32>
    %cst_18 = arith.constant 0.000000e+00 : f32
    %49 = vector.broadcast %cst_18 : f32 to vector<16x1000xf32>
    %50 = arith.subf %49, %48 : vector<16x1000xf32>
    %51 = math.exp %50 : vector<16x1000xf32>
    %52 = arith.mulf %47, %51 : vector<16x1000xf32>
    %cst_19 = arith.constant 1.000000e+00 : f32
    %53 = vector.broadcast %cst_19 : f32 to vector<16x1000xf32>
    %54 = arith.subf %53, %52 : vector<16x1000xf32>
    %cst_20 = arith.constant 0.000000e+00 : f32
    %55 = vector.broadcast %cst_20 : f32 to vector<16x1000xf32>
    %56 = arith.cmpf olt, %24, %55 : vector<16x1000xf32>
    %cst_21 = arith.constant 0.000000e+00 : f32
    %57 = vector.broadcast %cst_21 : f32 to vector<16x1000xf32>
    %58 = arith.subf %57, %54 : vector<16x1000xf32>
    %59 = arith.select %56, %58, %54 : vector<16x1000xi1>, vector<16x1000xf32>
    %cst_22 = arith.constant 5.000000e-01 : f32
    %60 = vector.broadcast %cst_22 : f32 to vector<16x1000xf32>
    %61 = arith.mulf %60, %24 : vector<16x1000xf32>
    %cst_23 = arith.constant 1.000000e+00 : f32
    %62 = vector.broadcast %cst_23 : f32 to vector<16x1000xf32>
    %63 = arith.addf %62, %59 : vector<16x1000xf32>
    %64 = arith.mulf %61, %63 : vector<16x1000xf32>
    %cst_24 = arith.constant dense<0.000000e+00> : vector<3x1000xf32>
    %65 = tpu.matmul %2, %64, %cst_24 {dimension_numbers = #tpu.dot_dimension_numbers<[1], [0], [0], [1], [0, 0, 1, 1], [], []>} : vector<3x16xf32>, vector<16x1000xf32>, vector<3x1000xf32> -> vector<3x1000xf32>
    %66 = vector.broadcast %3 : vector<3x1xf32> to vector<3x1000xf32>
    %67 = arith.addf %65, %66 : vector<3x1000xf32>
    %68 = math.tanh %67 : vector<3x1000xf32>
    %cst_25 = arith.constant 5.000000e-02 : f32
    %69 = vector.broadcast %cst_25 : f32 to vector<3x1000xf32>
    %70 = arith.mulf %68, %69 : vector<3x1000xf32>
    %71 = arith.addf %8, %70 : vector<3x1000xf32>
    %cst_26 = arith.constant 0.000000e+00 : f32
    %cst_27 = arith.constant 1.000000e+00 : f32
    %72 = vector.broadcast %cst_26 : f32 to vector<3x1000xf32>
    %73 = arith.maximumf %72, %71 : vector<3x1000xf32>
    %74 = vector.broadcast %cst_27 : f32 to vector<3x1000xf32>
    %75 = arith.minimumf %74, %73 : vector<3x1000xf32>
    %c0_28 = arith.constant 0 : index
    %c0_29 = arith.constant 0 : index
    %c0_30 = arith.constant 0 : index
    %76 = vector.load %arg7[%c0_28, %c0_29, %c0_30] : memref<1x3x1000xf32, #tpu.memory_space<vmem>>, vector<1x3x1000xf32>
    %77 = vector.shape_cast %76 : vector<1x3x1000xf32> to vector<3x1000xf32>
    %78 = vector.shape_cast %75 : vector<3x1000xf32> to vector<1x3x1000xf32>
    tpu.vector_store %arg7[%c0_28, %c0_29, %c0_30], %78 {strides = array<i32>} : memref<1x3x1000xf32, #tpu.memory_space<vmem>>, vector<1x3x1000xf32>,
    return
  }
  func.func @transform_0(%arg0: i32, %arg1: i32) -> (i32, i32, i32) {
    %c0_i32 = arith.constant 0 : i32
    %c0_i32_0 = arith.constant 0 : i32
    return %arg0, %c0_i32, %arg1 : i32, i32, i32
  }
  func.func @transform_1(%arg0: i32, %arg1: i32) -> (i32, i32) {
    %c0_i32 = arith.constant 0 : i32
    %c0_i32_0 = arith.constant 0 : i32
    %c0_i32_1 = arith.constant 0 : i32
    return %c0_i32, %c0_i32_0 : i32, i32
  }
  func.func @transform_2(%arg0: i32, %arg1: i32) -> (i32, i32) {
    %c0_i32 = arith.constant 0 : i32
    %c0_i32_0 = arith.constant 0 : i32
    %c0_i32_1 = arith.constant 0 : i32
    return %c0_i32, %c0_i32_0 : i32, i32
  }
  func.func @transform_3(%arg0: i32, %arg1: i32) -> (i32, i32) {
    %c0_i32 = arith.constant 0 : i32
    %c0_i32_0 = arith.constant 0 : i32
    %c0_i32_1 = arith.constant 0 : i32
    return %c0_i32, %c0_i32_0 : i32, i32
  }
  func.func @transform_4(%arg0: i32, %arg1: i32) -> (i32, i32) {
    %c0_i32 = arith.constant 0 : i32
    %c0_i32_0 = arith.constant 0 : i32
    %c0_i32_1 = arith.constant 0 : i32
    return %c0_i32, %c0_i32_0 : i32, i32
  }
  func.func @transform_5(%arg0: i32, %arg1: i32) -> (i32, i32, i32) {
    %c0_i32 = arith.constant 0 : i32
    %c0_i32_0 = arith.constant 0 : i32
    return %arg0, %c0_i32, %arg1 : i32, i32, i32
  }
}

</mosaic_0001>

<bundles_post_ra>
// kernel: tpu_custom_call.1
= control target key start
LH: loop header
LB: loop body
LE: loop exit
PB: predicated region body
PF: predicated region fallthrough
CT: control target
= control target key end

     0   :  { %s1700_s18 = smov 0   ;;  %s1702_s19 = smov 0   ;;  %s2216_s0 = inlined_call_operand.vmem [shape: f32[2,3,1000], index: 0, kind: input, shape index: {}]   ;;  %s2217_s1 = inlined_call_operand.vmem [shape: f32[16,3], index: 1, kind: input, shape index: {}]   ;;  %s2218_s2 = inlined_call_operand.vmem [shape: f32[16,1], index: 2, kind: input, shape index: {}]   ;;  %s2219_s3 = inlined_call_operand.vmem [shape: f32[3,16], index: 3, kind: input, shape index: {}]   ;;  %s2220_s4 = inlined_call_operand.vmem [shape: f32[3,1], index: 4, kind: input, shape index: {}]   ;;  %s2221_s5 = inlined_call_operand.vmem [shape: f32[2,3,1000], index: 5, kind: output, shape index: {}]  }
   0x1   :  { %s1704_s20 = smov 0  }
   0x2 LB: > { %s27_s21 = sadd.s32 1, %s1660_s19  ;;  %p1493_p0 = scmp.ge.s32.totalorder %s1664_s20, 1  ;;  %s1664_s20 = sphi %s1704_s20, %s15_s20   ;;  %s1660_s19 = sphi %s1702_s19, %s2237_s19   ;;  %s1656_s18 = sphi %s1700_s18, %s2236_s18  }
   0x3   : > { %p29_p1 = scmp.ge.s32.totalorder %s27_s21, 2  ;;  %p208_p2 = scmp.lt.s32.totalorder %s1664_s20, 3 }
   0x5   : > { %s2239_s21 = smov (%p29_p1, %s27_s21), 0  ;;  %p209_p3 = pnand %p1493_p0, %p208_p2 }
   0x7   : > { %212 = sbr.rel (%p209_p3) target bundleno = 530 (0x212), region = 40 }
   0xe   : > { %v266_v0 = vld [vmem:[%s2218_s2] sm:$0xff]  ;;  %v1666_v2 = vmov 0   ;;  %v267_v3 = vld [vmem:[%s2218_s2 + $0x8] sm:$0xff]  ;;  %v1667_v5 = vmov 1   ;;  %v1668_v6 = vmov 2   ;;  %p245_p4 = scmp.lt.s32.totalorder %s1656_s18, 1  ;;  %v288_v7 = vlaneseq }
   0xf   : > { %v264_v1 = vld [vmem:[%s2217_s1] sm:$0xff]  ;;  %1551 = vset.pattern.permute.xlu1 %v1666_v2  ;;  %1550 = vset.pattern.permute.xlu0 %v1666_v2  ;;  %v265_v4 = vld [vmem:[%s2217_s1 + $0x8] sm:$0xff]  ;;  %vm1063_vm8 = vcmask 130048  }
  0x10   : > { %378 = vperm.xlu1 %1551, %v266_v0   ;;  %276 = vperm.xlu0 %1550, %v264_v1   ;;  %s2241_s18 = smov (!%p245_p4, %s1656_s18), 1  ;;  %v289_v8 = vshrl.u32 %v288_v7, 7 }
  0x11   : > { %s1504_s30 = sshll.u32 %s2241_s18, 5 }
  0x12   : > { %s1742_s8 = scalar_lea.vmem %s2216_s0, %s1504_s30  ;;  %v294_v9 = vsub.s32 4, %v289_v8  ;;  %v290_v11 = vsub.s32 0, %v289_v8  ;;  %v1747_v14 = vsub.s32 5, %v289_v8  ;;  %v1749_v15 = vsub.s32 1, %v289_v8  ;;  %s2198_s15 = scalar_lea.vmem %s2221_s5, %s1504_s30 }
  0x13   : > { %v273_v10 = vld [vmem:[%s1742_s8 + $0x18] sm:$0x77]  ;;  %v1752_v17 = vsub.s32 6, %v289_v8  ;;  %v524_v19 = vsub.s32 2, %v289_v8  ;;  %v272_v22 = vld [vmem:[%s1742_s8 + $0x10] sm:$0x77] }
  0x14   : > { %383 = vperm.xlu1 %1551, %v267_v3   ;;  %281 = vperm.xlu0 %1550, %v265_v4   ;;  %v319_v12 = vrot.slane %v273_v10, %v294_v9  ;;  %v441_v16 = vrot.slane %v273_v10, %v1747_v14  ;;  %v270_v23 = vld [vmem:[%s1742_s8] sm:$0x77]  ;;  %v271_v24 = vld [vmem:[%s1742_s8 + $0x8] sm:$0x77]  ;;  %v307_v25 = vrot.slane %v272_v22, %v290_v11 }
  0x15   : > { %v553_v20 = vrot.slane %v273_v10, %v1752_v17  ;;  %v315_v26 = vrot.slane %v273_v10, %v290_v11  ;;  %v429_v27 = vrot.slane %v272_v22, %v1749_v15  ;;  %v437_v28 = vrot.slane %v273_v10, %v1749_v15 }
  0x16   : > { %v1745_v13 = vrot.slane %v319_v12, %v290_v11  ;;  %v1755_v18 = vrot.slane %v441_v16, %v1749_v15  ;;  %v295_v29 = vrot.slane %v270_v23, %v294_v9  ;;  %v417_v30 = vrot.slane %v270_v23, %v1747_v14 }
  0x17   : > { %v1758_v21 = vrot.slane %v553_v20, %v524_v19  ;;  %v303_v31 = vrot.slane %v271_v24, %v294_v9  ;;  %v425_v32 = vrot.slane %v271_v24, %v1747_v14  ;;  %v541_v33 = vrot.slane %v272_v22, %v524_v19 }
  0x18   : > { %1553 = vset.pattern.permute.xlu1 %v1667_v5  ;;  %1552 = vset.pattern.permute.xlu0 %v1667_v5  ;;  %v549_v34 = vrot.slane %v273_v10, %v524_v19  ;;  %v529_v35 = vrot.slane %v270_v23, %v1752_v17  ;;  %v537_v36 = vrot.slane %v271_v24, %v1752_v17 }
  0x19   : > { %407 = vperm.xlu1 %1553, %v265_v4   ;;  %403 = vperm.xlu0 %1552, %v264_v1   ;;  %v291_v37 = vrot.slane %v270_v23, %v290_v11  ;;  %v347_v38 = vrot.slane %v307_v25, %v290_v11  ;;  %v355_v39 = vrot.slane %v315_v26, %v290_v11 }
  0x1a   : > { %v469_v40 = vrot.slane %v429_v27, %v1749_v15  ;;  %v477_v41 = vrot.slane %v437_v28, %v1749_v15  ;;  %v335_v42 = vrot.slane %v295_v29, %v290_v11  ;;  %v457_v43 = vrot.slane %v417_v30, %v1749_v15 }
  0x1b   : > { %v343_v44 = vrot.slane %v303_v31, %v290_v11  ;;  %v1773_v45 = vrot.slane %v425_v32, %v1749_v15  ;;  %v1775_v46 = vrot.slane %v541_v33, %v524_v19  ;;  %v413_v47 = vrot.slane %v270_v23, %v1749_v15 }
  0x1c   : > { %v299_v48 = vrot.slane %v271_v24, %v290_v11  ;;  %v311_v49 = vrot.slane %v272_v22, %v294_v9  ;;  %v1778_v52 = vrot.slane %v549_v34, %v524_v19  ;;  %v1780_v53 = vrot.slane %v529_v35, %v524_v19 }
  0x1d   : > { %1554 = vset.pattern.permute.xlu1 %v1668_v6  ;;  %1555 = vset.pattern.permute.xlu0 %v1668_v6  ;;  %v1782_v54 = vrot.slane %v537_v36, %v524_v19  ;;  %v331_v55 = vrot.slane %v291_v37, %v290_v11  ;;  %v525_v58 = vrot.slane %v270_v23, %v524_v19  ;;  %v2222_v30 = vmov 0.0  }
  0x1e   : > { %515 = vperm.xlu1 %1554, %v264_v1   ;;  %519 = vperm.xlu0 %1555, %v265_v4   ;;  %2225 = vst [vmem:[#allocation2_spill] sm:$0xff] %v1778_v52  ;;  %v421_v59 = vrot.slane %v271_v24, %v1749_v15  ;;  %v533_v60 = vrot.slane %v271_v24, %v524_v19 }
  0x1f   : > { %v433_v61 = vrot.slane %v272_v22, %v1747_v14  ;;  %v545_v62 = vrot.slane %v272_v22, %v1752_v17  ;;  %v339_v0 = vrot.slane %v299_v48, %v290_v11  ;;  %v351_v1 = vrot.slane %v311_v49, %v290_v11  ;;  %1131 = vmatprep.mubr.f32.mxu0 %v2222_v30 }
  0x20   : > { %v453_v8 = vrot.slane %v413_v47, %v1749_v15  ;;  %v565_v14 = vrot.slane %v525_v58, %v524_v19  ;;  %v461_v16 = vrot.slane %v421_v59, %v1749_v15  ;;  %v1798_v17 = vrot.slane %v533_v60, %v524_v19  ;;  %1202 = vmatprep.mubr.f32.mxu1 %v2222_v30 }
  0x21   : > { %v1801_v11 = vrot.slane %v433_v61, %v1749_v15  ;;  %v1803_v20 = vrot.slane %v545_v62, %v524_v19 }
  0x22   : > { %1556 = vset.pattern.permute.xlu1 %v1666_v2  ;;  %1557 = vset.pattern.permute.xlu0 %v1666_v2 }
  0x8f   : > { %v379_v50 = vpop.permute.xlu1 %378  ;;  %v277_v51 = vpop.permute.xlu0 %276 }
  0x90   : > { %v364_v56 = vmul.f32 %v347_v38, %v277_v51  ;;  %v366_v57 = vmul.f32 %v355_v39, %v277_v51  ;;  %v367_v63 = vmul.f32 %v1745_v13, %v277_v51  ;;  %v361_v6 = vmul.f32 %v335_v42, %v277_v51 }
  0x91   : > { %v363_v7 = vmul.f32 %v343_v44, %v277_v51  ;;  %v360_v23 = vmul.f32 %v331_v55, %v277_v51  ;;  %v362_v24 = vmul.f32 %v339_v0, %v277_v51  ;;  %v365_v25 = vmul.f32 %v351_v1, %v277_v51 }
  0x92   : > { %v1788_v2 = vadd.f32 %v379_v50, %v364_v56  ;;  %v1790_v3 = vadd.f32 %v379_v50, %v366_v57  ;;  %v1795_v9 = vadd.f32 %v379_v50, %v367_v63  ;;  %v387_v27 = vadd.f32 %v379_v50, %v361_v6 }
  0x93   : > { %v1792_v4 = vpop.permute.xlu1 %383  ;;  %v282_v5 = vpop.permute.xlu0 %281  ;;  %v389_v28 = vadd.f32 %v379_v50, %v363_v7  ;;  %v1840_v51 = vadd.f32 %v379_v50, %v365_v25 }
  0x94   : > { %v372_v10 = vmul.f32 %v347_v38, %v282_v5  ;;  %v374_v12 = vmul.f32 %v355_v39, %v282_v5  ;;  %v375_v22 = vmul.f32 %v1745_v13, %v282_v5  ;;  %v369_v26 = vmul.f32 %v335_v42, %v282_v5 }
  0x95   : > { %v371_v19 = vmul.f32 %v343_v44, %v282_v5  ;;  %v368_v32 = vmul.f32 %v331_v55, %v282_v5  ;;  %v386_v42 = vadd.f32 %v379_v50, %v360_v23  ;;  %v388_v44 = vadd.f32 %v379_v50, %v362_v24 }
  0x96   : > { %v1807_v29 = vadd.f32 %v1792_v4, %v375_v22  ;;  %v1816_v13 = vadd.f32 %v1792_v4, %v372_v10  ;;  %v1819_v33 = vadd.f32 %v1792_v4, %v374_v12  ;;  %v395_v47 = vadd.f32 %v1792_v4, %v369_v26 }
  0x97   : > { %v370_v55 = vmul.f32 %v339_v0, %v282_v5  ;;  %v373_v56 = vmul.f32 %v351_v1, %v282_v5 }
  0x98   : > { %v1810_v31 = vpop.permute.xlu1 %407  ;;  %v1812_v15 = vpop.permute.xlu0 %403  ;;  %2226 = vst [vmem:[#allocation3_spill] sm:$0xff] %v1819_v33 }
  0x99   : > { %v1822_v34 = vmul.f32 %v469_v40, %v1810_v31  ;;  %v1825_v35 = vmul.f32 %v477_v41, %v1810_v31  ;;  %v1828_v36 = vmul.f32 %v469_v40, %v1812_v15  ;;  %v1831_v37 = vmul.f32 %v477_v41, %v1812_v15 }
  0x9a   : > { %v483_v38 = vmul.f32 %v457_v43, %v1812_v15  ;;  %v491_v39 = vmul.f32 %v457_v43, %v1810_v31  ;;  %v485_v48 = vmul.f32 %v1773_v45, %v1812_v15  ;;  %v493_v49 = vmul.f32 %v1773_v45, %v1810_v31 }
  0x9b   : > { %2227 = vst [vmem:[#allocation4_spill] sm:$0xff] %v1825_v35  ;;  %v397_v40 = vadd.f32 %v1792_v4, %v371_v19  ;;  %v394_v41 = vadd.f32 %v1792_v4, %v368_v32  ;;  %v482_v60 = vmul.f32 %v453_v8, %v1812_v15  ;;  %v490_v61 = vmul.f32 %v453_v8, %v1810_v31 }
  0x9c   : > { %v499_v58 = vadd.f32 %v483_v38, %v387_v27  ;;  %v507_v59 = vadd.f32 %v491_v39, %v395_v47  ;;  %v501_v0 = vadd.f32 %v485_v48, %v389_v28  ;;  %v484_v10 = vmul.f32 %v461_v16, %v1812_v15 }
  0x9d   : > { %v1844_v57 = vpop.permute.xlu1 %515  ;;  %v1846_v43 = vpop.permute.xlu0 %519  ;;  %v509_v1 = vadd.f32 %v493_v49, %v397_v40  ;;  %v492_v12 = vmul.f32 %v461_v16, %v1810_v31  ;;  %v396_v26 = vadd.f32 %v1792_v4, %v370_v55  ;;  %v1882_v27 = vadd.f32 %v1792_v4, %v373_v56 }
  0x9e   : > { %v1852_v45 = vmul.f32 %v1775_v46, %v1846_v43  ;;  %v1856_v50 = vmul.f32 %v1778_v52, %v1846_v43  ;;  %v595_v62 = vmul.f32 %v1780_v53, %v1844_v57  ;;  %v603_v63 = vmul.f32 %v1780_v53, %v1846_v43 }
  0x9f   : > { %v597_v5 = vmul.f32 %v1782_v54, %v1844_v57  ;;  %v605_v6 = vmul.f32 %v1782_v54, %v1846_v43  ;;  %v594_v53 = vmul.f32 %v565_v14, %v1844_v57  ;;  %v602_v24 = vmul.f32 %v565_v14, %v1846_v43 }
  0xa0   : > { %2228 = vst [vmem:[#allocation5_spill] sm:$0xff] %v1856_v50  ;;  %v1866_v7 = vadd.f32 %v595_v62, %v499_v58  ;;  %v1868_v8 = vadd.f32 %v603_v63, %v507_v59  ;;  %v498_v19 = vadd.f32 %v482_v60, %v386_v42  ;;  %v506_v32 = vadd.f32 %v490_v61, %v394_v41 }
  0xa1   : > { %v1872_v22 = vadd.f32 %v597_v5, %v501_v0  ;;  %v1874_v23 = vadd.f32 %v605_v6, %v509_v1  ;;  %v500_v47 = vadd.f32 %v484_v10, %v388_v44  ;;  %v508_v48 = vadd.f32 %v492_v12, %v396_v26  ;;  %v269_v44 = vld [vmem:[%s2220_s4] sm:$0x7] }
  0xa2   : > { %v627_v25 = vand.u32 2147483647, %v1866_v7  ;;  %v635_v54 = vand.u32 2147483647, %v1868_v8  ;;  %v1886_v40 = vadd.f32 %v594_v53, %v498_v19  ;;  %v1888_v58 = vadd.f32 %v602_v24, %v506_v32  ;;  %1060 = vperm.xlu1 %1556, %v269_v44  }
  0xa3   : > { %v629_v28 = vand.u32 2147483647, %v1872_v22  ;;  %v637_v16 = vand.u32 2147483647, %v1874_v23  ;;  %v596_v10 = vmul.f32 %v1798_v17, %v1844_v57  ;;  %v604_v12 = vmul.f32 %v1798_v17, %v1846_v43 }
  0xa4   : > { %v643_v38 = vmul.f32 0.70710677, %v627_v25  ;;  %v651_v39 = vmul.f32 0.70710677, %v635_v54  ;;  %v626_v25 = vand.u32 2147483647, %v1886_v40 }
  0xa5   : > { %v645_v14 = vmul.f32 0.70710677, %v629_v28  ;;  %v653_v49 = vmul.f32 0.70710677, %v637_v16  ;;  %v1899_v54 = vmul.f32 0.5, %v1866_v7  ;;  %v1903_v19 = vmul.f32 0.5, %v1868_v8 }
  0xa6   : > { %v659_v55 = vmul.f32 0.3275911, %v643_v38  ;;  %v667_v59 = vmul.f32 0.3275911, %v651_v39  ;;  %v867_v4 = vmul.f32 %v643_v38, %v643_v38  ;;  %v875_v56 = vmul.f32 %v651_v39, %v651_v39 }
  0xa7   : > { %v661_v62 = vmul.f32 0.3275911, %v645_v14  ;;  %v669_v63 = vmul.f32 0.3275911, %v653_v49  ;;  %v869_v0 = vmul.f32 %v645_v14, %v645_v14  ;;  %v877_v1 = vmul.f32 %v653_v49, %v653_v49 }
  0xa8   : > { %v675_v42 = vadd.f32 1.0, %v659_v55  ;;  %v683_v41 = vadd.f32 1.0, %v667_v59  ;;  %v883_v60 = vsub.f32 0.0, %v867_v4  ;;  %v891_v61 = vsub.f32 0.0, %v875_v56 }
  0xa9   : > { %v885_v5 = vsub.f32 0.0, %v869_v0  ;;  %v893_v6 = vsub.f32 0.0, %v877_v1  ;;  %v677_v24 = vadd.f32 1.0, %v661_v62  ;;  %v685_v26 = vadd.f32 1.0, %v669_v63 }
  0xaa   : > { %1558 = vrcp.f32 %v675_v42  ;;  %v900_v53 = vmul.f32 1.442695, %v883_v60  ;;  %v634_v28 = vand.u32 2147483647, %v1888_v58  ;;  %v916_v16 = vmul.f32 1.442695, %v891_v61 }
  0xab   : > { %1560 = vrcp.f32 %v683_v41  ;;  %v1906_v32 = vmul.f32 0.5, %v1872_v22  ;;  %v642_v17 = vmul.f32 0.70710677, %v626_v25  ;;  %v904_v38 = vmul.f32 1.442695, %v885_v5 }
  0xac   : > { %1562 = vpow2.f32 %v900_v53  ;;  %v920_v39 = vmul.f32 1.442695, %v893_v6  ;;  %v650_v14 = vmul.f32 0.70710677, %v634_v28  ;;  %v1908_v59 = vadd.f32 %v596_v10, %v500_v47 }
  0xad   : > { %1564 = vrcp.f32 %v677_v24  ;;  %v658_v49 = vmul.f32 0.3275911, %v642_v17  ;;  %v866_v55 = vmul.f32 %v642_v17, %v642_v17  ;;  %v1910_v62 = vadd.f32 %v604_v12, %v508_v48 }
  0xae   : > { %1566 = vrcp.f32 %v685_v26  ;;  %v666_v4 = vmul.f32 0.3275911, %v650_v14  ;;  %v874_v56 = vmul.f32 %v650_v14, %v650_v14  ;;  %v628_v1 = vand.u32 2147483647, %v1908_v59 }
  0xaf   : > { %1568 = vpow2.f32 %v916_v16  ;;  %v674_v63 = vadd.f32 1.0, %v658_v49  ;;  %v882_v0 = vsub.f32 0.0, %v866_v55  ;;  %v636_v60 = vand.u32 2147483647, %v1910_v62 }
  0xb0   : > { %1570 = vpow2.f32 %v904_v38  ;;  %v682_v42 = vadd.f32 1.0, %v666_v4  ;;  %v890_v41 = vsub.f32 0.0, %v874_v56  ;;  %v1915_v61 = vmul.f32 0.5, %v1874_v23 }
  0xb1   : > { %1572 = vrcp.f32 %v674_v63  ;;  %v898_v47 = vmul.f32 1.442695, %v882_v0  ;;  %v644_v44 = vmul.f32 0.70710677, %v628_v1  ;;  %v1918_v48 = vmul.f32 0.5, %v1886_v40 }
  0xb2   : > { %1574 = vrcp.f32 %v682_v42  ;;  %v914_v5 = vmul.f32 1.442695, %v890_v41  ;;  %v652_v6 = vmul.f32 0.70710677, %v636_v60  ;;  %v1923_v12 = vmul.f32 0.5, %v1888_v58 }
  0xb3   : > { %1576 = vpow2.f32 %v920_v39  ;;  %v660_v53 = vmul.f32 0.3275911, %v644_v44  ;;  %v868_v24 = vmul.f32 %v644_v44, %v644_v44  ;;  %v487_v56 = vmul.f32 %v1801_v11, %v1812_v15 }
  0xb4   : > { %v1920_v10 = vpop.eup %1558  ;;  %1578 = vpow2.f32 %v898_v47  ;;  %v668_v28 = vmul.f32 0.3275911, %v652_v6  ;;  %v876_v16 = vmul.f32 %v652_v6, %v652_v6  ;;  %v495_v42 = vmul.f32 %v1801_v11, %v1810_v31 }
  0xb5   : > { %v1925_v25 = vpop.eup %1560  ;;  %v723_v26 = vmul.f32 1.0614054, %v1920_v10  ;;  %1580 = vpow2.f32 %v914_v5  ;;  %v676_v38 = vadd.f32 1.0, %v660_v53  ;;  %v884_v14 = vsub.f32 0.0, %v868_v24 }
  0xb6   : > { %v731_v17 = vmul.f32 1.0614054, %v1925_v25  ;;  %v1929_v49 = vpop.eup %1562  ;;  %v684_v55 = vadd.f32 1.0, %v668_v28  ;;  %v892_v4 = vsub.f32 0.0, %v876_v16  ;;  %v503_v24 = vadd.f32 %v487_v56, %v1840_v51 }
  0xb7   : > { %v739_v39 = vadd.f32 -1.4531521, %v723_v26  ;;  %v1933_v63 = vpop.eup %1564  ;;  %1582 = vrcp.f32 %v676_v38  ;;  %v902_v1 = vmul.f32 1.442695, %v884_v14  ;;  %v511_v16 = vadd.f32 %v495_v42, %v1882_v27 }
  0xb8   : > { %v747_v0 = vadd.f32 -1.4531521, %v731_v17  ;;  %v1937_v41 = vpop.eup %1566  ;;  %v725_v47 = vmul.f32 1.0614054, %v1933_v63  ;;  %1584 = vrcp.f32 %v684_v55  ;;  %v918_v44 = vmul.f32 1.442695, %v892_v4 }
  0xb9   : > { %v755_v60 = vmul.f32 %v1920_v10, %v739_v39  ;;  %v1941_v5 = vpop.eup %1568  ;;  %v733_v53 = vmul.f32 1.0614054, %v1937_v41  ;;  %1586 = vpow2.f32 %v902_v1  ;;  %v599_v39 = vmul.f32 %v1803_v20, %v1844_v57 }
  0xba   : > { %v763_v6 = vmul.f32 %v1925_v25, %v747_v0  ;;  %v1946_v26 = vpop.eup %1570  ;;  %v741_v28 = vadd.f32 -1.4531521, %v725_v47  ;;  %1588 = vpow2.f32 %v918_v44  ;;  %v607_v55 = vmul.f32 %v1803_v20, %v1846_v43 }
  0xbb   : > { %v771_v11 = vadd.f32 1.4214138, %v755_v60  ;;  %v1949_v17 = vpop.eup %1572  ;;  %v749_v14 = vadd.f32 -1.4531521, %v733_v53  ;;  %v489_v27 = vmul.f32 %v1755_v18, %v1812_v15  ;;  %v1967_v20 = vadd.f32 %v599_v39, %v503_v24 }
  0xbc   : > { %v779_v38 = vadd.f32 1.4214138, %v763_v6  ;;  %v1955_v4 = vpop.eup %1574  ;;  %v757_v56 = vmul.f32 %v1933_v63, %v741_v28  ;;  %v722_v0 = vmul.f32 1.0614054, %v1949_v17  ;;  %v1971_v28 = vadd.f32 %v607_v55, %v511_v16 }
  0xbd   : > { %v787_v51 = vmul.f32 %v1920_v10, %v771_v11  ;;  %v1962_v1 = vpop.eup %1576  ;;  %v765_v60 = vmul.f32 %v1937_v41, %v749_v14  ;;  %v730_v47 = vmul.f32 1.0614054, %v1955_v4  ;;  %vm963_vm0 = vcmp.lt.f32.partialorder %v1866_v7, 0.0 }
  0xbe   : > { %v795_v42 = vmul.f32 %v1925_v25, %v779_v38  ;;  %v1969_v44 = vpop.eup %1578  ;;  %v773_v53 = vadd.f32 1.4214138, %v757_v56  ;;  %v738_v11 = vadd.f32 -1.4531521, %v722_v0  ;;  %v497_v38 = vmul.f32 %v1755_v18, %v1810_v31 }
  0xbf   : > { %v803_v6 = vadd.f32 -0.28449672, %v787_v51  ;;  %v1973_v30 = vpop.eup %1580  ;;  %v781_v50 = vadd.f32 1.4214138, %v765_v60  ;;  %v746_v52 = vadd.f32 -1.4531521, %v730_v47 }
  0xc0   : > { %v811_v15 = vadd.f32 -0.28449672, %v795_v42  ;;  %v789_v24 = vmul.f32 %v1933_v63, %v773_v53  ;;  %v754_v39 = vmul.f32 %v1949_v17, %v738_v11  ;;  %vm971_vm1 = vcmp.lt.f32.partialorder %v1868_v8, 0.0 }
  0xc1   : > { %v819_v14 = vmul.f32 %v1920_v10, %v803_v6  ;;  %v1981_v56 = vpop.eup %1582  ;;  %v797_v55 = vmul.f32 %v1937_v41, %v781_v50  ;;  %v762_v0 = vmul.f32 %v1955_v4, %v746_v52  ;;  %v1990_v6 = vadd.f32 %v489_v27, %v1795_v9 }
  0xc2   : > { %v827_v16 = vmul.f32 %v1925_v25, %v811_v15  ;;  %v1987_v60 = vpop.eup %1584  ;;  %v805_v31 = vadd.f32 -0.28449672, %v789_v24  ;;  %v770_v47 = vadd.f32 1.4214138, %v754_v39  ;;  %v1996_v50 = vadd.f32 %v497_v38, %v1807_v29 }
  0xc3   : > { %v835_v18 = vadd.f32 0.2548296, %v819_v14  ;;  %v1992_v53 = vpop.eup %1586  ;;  %v813_v15 = vadd.f32 -0.28449672, %v797_v55  ;;  %v778_v51 = vadd.f32 1.4214138, %v762_v0 }
  0xc4   : > { %v843_v11 = vadd.f32 0.2548296, %v827_v16  ;;  %v1998_v52 = vpop.eup %1588  ;;  %v821_v14 = vmul.f32 %v1933_v63, %v805_v31  ;;  %v786_v9 = vmul.f32 %v1949_v17, %v770_v47  ;;  %v724_v27 = vmul.f32 1.0614054, %v1981_v56 }
  0xc5   : > { %v851_v42 = vmul.f32 %v1920_v10, %v835_v18  ;;  %v829_v39 = vmul.f32 %v1937_v41, %v813_v15  ;;  %v794_v16 = vmul.f32 %v1955_v4, %v778_v51  ;;  %v732_v29 = vmul.f32 1.0614054, %v1987_v60 }
  0xc6   : > { %v859_v24 = vmul.f32 %v1925_v25, %v843_v11  ;;  %v837_v55 = vadd.f32 0.2548296, %v821_v14  ;;  %v802_v10 = vadd.f32 -0.28449672, %v786_v9  ;;  %v740_v0 = vadd.f32 -1.4531521, %v724_v27 }
  0xc7   : > { %v931_v38 = vmul.f32 %v1929_v49, %v851_v42  ;;  %v845_v31 = vadd.f32 0.2548296, %v829_v39  ;;  %vm965_vm2 = vcmp.lt.f32.partialorder %v1872_v22, 0.0  ;;  %v810_v47 = vadd.f32 -0.28449672, %v794_v16 }
  0xc8   : > { %v939_v18 = vmul.f32 %v1941_v5, %v859_v24  ;;  %v748_v35 = vadd.f32 -1.4531521, %v732_v29  ;;  %v853_v25 = vmul.f32 %v1933_v63, %v837_v55  ;;  %vm973_vm3 = vcmp.lt.f32.partialorder %v1874_v23, 0.0 }
  0xc9   : > { %v947_v33 = vsub.f32 1.0, %v931_v38  ;;  %v818_v51 = vmul.f32 %v1949_v17, %v802_v10  ;;  %v756_v11 = vmul.f32 %v1981_v56, %v740_v0  ;;  %v861_v42 = vmul.f32 %v1937_v41, %v845_v31 }
  0xca   : > { %v955_v49 = vsub.f32 1.0, %v939_v18  ;;  %v826_v15 = vmul.f32 %v1955_v4, %v810_v47  ;;  %v764_v5 = vmul.f32 %v1987_v60, %v748_v35  ;;  %v933_v9 = vmul.f32 %v1946_v26, %v853_v25 }
  0xcb   : > { %v979_v14 = vsub.f32 0.0, %v947_v33  ;;  %v834_v27 = vadd.f32 0.2548296, %v818_v51  ;;  %v772_v24 = vadd.f32 1.4214138, %v756_v11  ;;  %v941_v63 = vmul.f32 %v1962_v1, %v861_v42 }
  0xcc   : > { %v987_v39 = vsub.f32 0.0, %v955_v49  ;;  %v842_v16 = vadd.f32 0.2548296, %v826_v15  ;;  %vm962_vm4 = vcmp.lt.f32.partialorder %v1886_v40, 0.0  ;;  %v780_v29 = vadd.f32 1.4214138, %v764_v5 }
  0xcd   : > { %v995_v38 = vsel %vm963_vm0, %v979_v14, %v947_v33  ;;  %v949_v41 = vsub.f32 1.0, %v933_v9  ;;  %v850_v55 = vmul.f32 %v1949_v17, %v834_v27  ;;  %vm970_vm5 = vcmp.lt.f32.partialorder %v1888_v58, 0.0 }
  0xce   : > { %v788_v35 = vmul.f32 %v1981_v56, %v772_v24  ;;  %v1003_v26 = vsel %vm971_vm1, %v987_v39, %v955_v49  ;;  %v1027_v10 = vadd.f32 1.0, %v995_v38  ;;  %v957_v0 = vsub.f32 1.0, %v941_v63 }
  0xcf   : > { %v858_v1 = vmul.f32 %v1955_v4, %v842_v16  ;;  %v1035_v18 = vadd.f32 1.0, %v1003_v26  ;;  %v981_v31 = vsub.f32 0.0, %v949_v41  ;;  %v930_v47 = vmul.f32 %v1969_v44, %v850_v55 }
  0xd0   : > { %v796_v33 = vmul.f32 %v1987_v60, %v780_v29  ;;  %v1043_v7 = vmul.f32 %v1027_v10, %v1899_v54  ;;  %v989_v17 = vsub.f32 0.0, %v957_v0  ;;  %v804_v51 = vadd.f32 -0.28449672, %v788_v35 }
  0xd1   : > { %v938_v25 = vmul.f32 %v1973_v30, %v858_v1  ;;  %v1051_v11 = vmul.f32 %v1035_v18, %v1903_v19  ;;  %v997_v8 = vsel %vm965_vm2, %v981_v31, %v949_v41  ;;  %v946_v49 = vsub.f32 1.0, %v930_v47 }
  0xd2   : > { %v812_v42 = vadd.f32 -0.28449672, %v796_v33  ;;  %v1005_v4 = vsel %vm973_vm3, %v989_v17, %v957_v0  ;;  %v1029_v15 = vadd.f32 1.0, %v997_v8  ;;  %v820_v5 = vmul.f32 %v1981_v56, %v804_v51  ;;  %v2066_v51 = vld [vmem:[%s2219_s3] sm:$0x7] }
  0xd3   : > { %v954_v44 = vsub.f32 1.0, %v938_v25  ;;  %v1506_v14 = vpack.c.bf16 %v1051_v11, %v1043_v7  ;;  %v1037_v54 = vadd.f32 1.0, %v1005_v4  ;;  %v978_v9 = vsub.f32 0.0, %v946_v49 }
  0xd4   : > { %v828_v30 = vmul.f32 %v1987_v60, %v812_v42  ;;  %v1045_v27 = vmul.f32 %v1029_v15, %v1906_v32  ;;  %v836_v24 = vadd.f32 0.2548296, %v820_v5  ;;  %v2229_v22 = vand.u32 2147483647, %v1967_v20 }
  0xd5   : > { %v986_v19 = vsub.f32 0.0, %v954_v44  ;;  %1507 = vmatprep.subr.bf16.mxu0 %v1506_v14  ;;  %v1053_v23 = vmul.f32 %v1037_v54, %v1915_v61  ;;  %v994_v63 = vsel %vm962_vm4, %v978_v9, %v946_v49  ;;  %v2230_v29 = vand.u32 2147483647, %v1971_v28 }
  0xd6   : > { %v647_v39 = vmul.f32 0.70710677, %v2229_v22  ;;  %v844_v16 = vadd.f32 0.2548296, %v828_v30  ;;  %v1026_v55 = vadd.f32 1.0, %v994_v63  ;;  %v852_v32 = vmul.f32 %v1981_v56, %v836_v24  ;;  %v2232_v22 = vld [vmem:[#allocation3_spill] sm:$0xff] }
  0xd7   : > { %v655_v38 = vmul.f32 0.70710677, %v2230_v29  ;;  %v1002_v41 = vsel %vm970_vm5, %v986_v19, %v954_v44  ;;  %v1510_v26 = vpack.c.bf16 %v1053_v23, %v1045_v27  ;;  %vm964_vm6 = vcmp.lt.f32.partialorder %v1908_v59, 0.0 }
  0xd8   : > { %v663_v35 = vmul.f32 0.3275911, %v647_v39  ;;  %v1034_v10 = vadd.f32 1.0, %v1002_v41  ;;  %v860_v0 = vmul.f32 %v1987_v60, %v844_v16  ;;  %v1042_v61 = vmul.f32 %v1026_v55, %v1918_v48 }
  0xd9   : > { %v671_v1 = vmul.f32 0.3275911, %v655_v38  ;;  %v932_v40 = vmul.f32 %v1992_v53, %v852_v32  ;;  %1511 = vmatprep.subr.bf16.mxu1 %v1510_v26  ;;  %v871_v56 = vmul.f32 %v647_v39, %v647_v39  ;;  %v879_v25 = vmul.f32 %v655_v38, %v655_v38  ;;  %v2233_v39 = vld [vmem:[#allocation4_spill] sm:$0xff] }
  0xda   : > { %v679_v18 = vadd.f32 1.0, %v663_v35  ;;  %v1050_v31 = vmul.f32 %v1034_v10, %v1923_v12  ;;  %v940_v58 = vmul.f32 %v1998_v52, %v860_v0  ;;  %vm972_vm7 = vcmp.lt.f32.partialorder %v1910_v62, 0.0 }
  0xdb   : > { %v687_v47 = vadd.f32 1.0, %v671_v1  ;;  %v948_v33 = vsub.f32 1.0, %v932_v40  ;;  %v1012_v12 = vmul.f32 0.5, %v1908_v59  ;;  %v1020_v53 = vmul.f32 0.5, %v1910_v62 }
  0xdc   : > { %1590 = vrcp.f32 %v679_v18  ;;  %v1508_v7 = vpack.c.bf16 %v1050_v31, %v1042_v61  ;;  %v956_v17 = vsub.f32 1.0, %v940_v58  ;;  %v601_v52 = vmul.f32 %v1758_v21, %v1844_v57 }
  0xdd   : > { %1592 = vrcp.f32 %v687_v47  ;;  %v980_v48 = vsub.f32 0.0, %v948_v33  ;;  %v887_v8 = vsub.f32 0.0, %v871_v56  ;;  %v609_v49 = vmul.f32 %v1758_v21, %v1846_v43 }
  0xde   : > { %1509 = vmatpush1.bf16.msra.mxu0 %v1508_v7  ;;  %v988_v60 = vsub.f32 0.0, %v956_v17  ;;  %v502_v42 = vadd.f32 %v1828_v36, %v1788_v2  ;;  %v895_v15 = vsub.f32 0.0, %v879_v25  ;;  %v2073_v62 = vadd.f32 %v601_v52, %v1990_v6 }
  0xdf   : > { %v996_v11 = vsel %vm964_vm6, %v980_v48, %v948_v33  ;;  %v2076_v5 = vadd.f32 %v609_v49, %v1996_v50  ;;  %v510_v14 = vadd.f32 %v1822_v34, %v1816_v13  ;;  %v598_v21 = vmul.f32 %v1775_v46, %v1844_v57 }
  0xe0   : > { %v1004_v4 = vsel %vm972_vm7, %v988_v60, %v956_v17  ;;  %v1028_v59 = vadd.f32 1.0, %v996_v11  ;;  %v633_v36 = vand.u32 2147483647, %v2073_v62  ;;  %v2231_v43 = vmov 0.0   ;;  %v2234_v17 = vld [vmem:[#allocation2_spill] sm:$0xff] }
  0xe1   : > { %v1036_v44 = vadd.f32 1.0, %v1004_v4  ;;  %1498 = vmatmul.mubr.msk.f32.vlgmr.msra.gmra.mrb[0].mxu0 %vm1063_vm8, %v2066_v51  ;;  %v908_v54 = vmul.f32 1.442695, %v887_v8  ;;  %v641_v9 = vand.u32 2147483647, %v2076_v5  ;;  %v2087_v30 = vadd.f32 %v598_v21, %v502_v42  ;;  %v2235_v4 = vld [vmem:[#allocation5_spill] sm:$0xff] }
  0xe2   : > { %v1044_v2 = vmul.f32 %v1028_v59, %v1012_v12  ;;  %1273 = vmatprep.mubr.f32.mxu0 %v2231_v43  ;;  %v649_v50 = vmul.f32 0.70710677, %v633_v36  ;;  %v2090_v27 = vadd.f32 %v1852_v45, %v510_v14  ;;  %v504_v13 = vadd.f32 %v1831_v37, %v1790_v3 }
  0xe3   : > { %v1052_v6 = vmul.f32 %v1036_v44, %v1020_v53  ;;  %v924_v19 = vmul.f32 1.442695, %v895_v15  ;;  %v657_v24 = vmul.f32 0.70710677, %v641_v9  ;;  %v512_v23 = vadd.f32 %v2233_v39, %v2232_v22 }
  0xe4   : > { %v665_v29 = vmul.f32 0.3275911, %v649_v50  ;;  %v630_v38 = vand.u32 2147483647, %v2087_v30  ;;  %v638_v3 = vand.u32 2147483647, %v2090_v27  ;;  %1594 = vpow2.f32 %v908_v54 }
  0xe5   : > { %v1512_v46 = vpack.c.bf16 %v1052_v6, %v1044_v2  ;;  %v673_v41 = vmul.f32 0.3275911, %v657_v24  ;;  %v873_v10 = vmul.f32 %v649_v50, %v649_v50  ;;  %v881_v61 = vmul.f32 %v657_v24, %v657_v24 }
  0xe6   : > { %v2094_v34 = vpop.eup %1590  ;;  %v681_v55 = vadd.f32 1.0, %v665_v29  ;;  %v646_v32 = vmul.f32 0.70710677, %v630_v38  ;;  %v654_v0 = vmul.f32 0.70710677, %v638_v3  ;;  %v600_v25 = vmul.f32 %v2234_v17, %v1844_v57 }
  0xe7   : > { %v2098_v63 = vpop.eup %1592  ;;  %v727_v16 = vmul.f32 1.0614054, %v2094_v34  ;;  %1513 = vmatpush1.bf16.msra.mxu1 %v1512_v46  ;;  %v689_v26 = vadd.f32 1.0, %v673_v41  ;;  %v889_v56 = vsub.f32 0.0, %v873_v10  ;;  %v897_v60 = vsub.f32 0.0, %v881_v61 }
  0xe8   : > { %v735_v45 = vmul.f32 1.0614054, %v2098_v63  ;;  %1596 = vrcp.f32 %v681_v55  ;;  %v662_v40 = vmul.f32 0.3275911, %v646_v32  ;;  %v670_v31 = vmul.f32 0.3275911, %v654_v0 }
  0xe9   : > { %v743_v37 = vadd.f32 -1.4531521, %v727_v16  ;;  %1598 = vrcp.f32 %v689_v26  ;;  %v870_v53 = vmul.f32 %v646_v32, %v646_v32  ;;  %v878_v11 = vmul.f32 %v654_v0, %v654_v0 }
  0xea   : > { %v751_v35 = vadd.f32 -1.4531521, %v735_v45  ;;  %1499 = vmatmul.mubr.msk.f32.vlgmr.msra.gmra.mrb[0].mxu1 %vm1063_vm8, %v2066_v51  ;;  %1600 = vpow2.f32 %v924_v19  ;;  %v678_v47 = vadd.f32 1.0, %v662_v40  ;;  %v686_v7 = vadd.f32 1.0, %v670_v31 }
  0xeb   : > { %v759_v1 = vmul.f32 %v2094_v34, %v743_v37  ;;  %1344 = vmatprep.mubr.f32.mxu1 %v2231_v43  ;;  %v912_v49 = vmul.f32 1.442695, %v889_v56  ;;  %v2113_v42 = vadd.f32 %v600_v25, %v504_v13  ;;  %v2116_v59 = vadd.f32 %v2235_v4, %v512_v23 }
  0xec   : > { %v767_v18 = vmul.f32 %v2098_v63, %v751_v35  ;;  %1602 = vrcp.f32 %v678_v47  ;;  %v928_v44 = vmul.f32 1.442695, %v897_v60  ;;  %v886_v21 = vsub.f32 0.0, %v870_v53 }
  0xed   : > { %v775_v58 = vadd.f32 1.4214138, %v759_v1  ;;  %1604 = vrcp.f32 %v686_v7  ;;  %v632_v2 = vand.u32 2147483647, %v2113_v42  ;;  %v640_v36 = vand.u32 2147483647, %v2116_v59 }
  0xee   : > { %v783_v33 = vadd.f32 1.4214138, %v767_v18  ;;  %v1595_v15 = vpop.eup %1594  ;;  %v1015_v54 = vmul.f32 0.5, %v1967_v20  ;;  %v1023_v9 = vmul.f32 0.5, %v1971_v28  ;;  %v894_v50 = vsub.f32 0.0, %v878_v11 }
  0xef   : > { %v791_v48 = vmul.f32 %v2094_v34, %v775_v58  ;;  %vm967_vm9 = vcmp.lt.f32.partialorder %v1967_v20, 0.0  ;;  %1606 = vpow2.f32 %v912_v49  ;;  %v648_v24 = vmul.f32 0.70710677, %v632_v2 }
  0xf0   : > { %v799_v12 = vmul.f32 %v2098_v63, %v783_v33  ;;  %vm975_vm10 = vcmp.lt.f32.partialorder %v1971_v28, 0.0  ;;  %1608 = vpow2.f32 %v928_v44  ;;  %v656_v16 = vmul.f32 0.70710677, %v640_v36 }
  0xf1   : > { %v807_v52 = vadd.f32 -0.28449672, %v791_v48  ;;  %v906_v45 = vmul.f32 1.442695, %v886_v21  ;;  %v664_v41 = vmul.f32 0.3275911, %v648_v24  ;;  %v872_v21 = vmul.f32 %v648_v24, %v648_v24 }
  0xf2   : > { %v815_v8 = vadd.f32 -0.28449672, %v799_v12  ;;  %v2122_v43 = vpop.eup %1596  ;;  %v922_v32 = vmul.f32 1.442695, %v894_v50  ;;  %v672_v35 = vmul.f32 0.3275911, %v656_v16 }
  0xf3   : > { %v823_v57 = vmul.f32 %v2094_v34, %v807_v52  ;;  %v2126_v13 = vpop.eup %1598  ;;  %v729_v19 = vmul.f32 1.0614054, %v2122_v43  ;;  %v680_v1 = vadd.f32 1.0, %v664_v41  ;;  %vm969_vm11 = vcmp.lt.f32.partialorder %v2073_v62, 0.0 }
  0xf4   : > { %v831_v14 = vmul.f32 %v2098_v63, %v815_v8  ;;  %v1601_v22 = vpop.eup %1600  ;;  %v737_v23 = vmul.f32 1.0614054, %v2126_v13  ;;  %v688_v18 = vadd.f32 1.0, %v672_v35  ;;  %vm977_vm12 = vcmp.lt.f32.partialorder %v2076_v5, 0.0 }
  0xf5   : > { %v839_v6 = vadd.f32 0.2548296, %v823_v57  ;;  %v745_v38 = vadd.f32 -1.4531521, %v729_v19  ;;  %1610 = vrcp.f32 %v680_v1  ;;  %vm966_vm13 = vcmp.lt.f32.partialorder %v2087_v30, 0.0 }
  0xf6   : > { %v847_v46 = vadd.f32 0.2548296, %v831_v14  ;;  %v2134_v3 = vpop.eup %1602  ;;  %v753_v55 = vadd.f32 -1.4531521, %v737_v23  ;;  %1612 = vrcp.f32 %v688_v18  ;;  %vm974_vm14 = vcmp.lt.f32.partialorder %v2090_v27, 0.0 }
  0xf7   : > { %v855_v39 = vmul.f32 %v2094_v34, %v839_v6  ;;  %v2136_v26 = vpop.eup %1604  ;;  %v761_v10 = vmul.f32 %v2122_v43, %v745_v38  ;;  %v726_v0 = vmul.f32 1.0614054, %v2134_v3  ;;  %1614 = vpow2.f32 %v906_v45 }
  0xf8   : > { %v863_v29 = vmul.f32 %v2098_v63, %v847_v46  ;;  %v769_v63 = vmul.f32 %v2126_v13, %v753_v55  ;;  %v734_v40 = vmul.f32 1.0614054, %v2136_v26  ;;  %1616 = vpow2.f32 %v922_v32 }
  0xf9   : > { %v935_v37 = vmul.f32 %v1595_v15, %v855_v39  ;;  %v777_v58 = vadd.f32 1.4214138, %v761_v10  ;;  %v742_v47 = vadd.f32 -1.4531521, %v726_v0  ;;  %v1607_v52 = vpop.eup %1606  ;;  %v880_v6 = vmul.f32 %v656_v16, %v656_v16 }
  0xfa   : > { %v943_v34 = vmul.f32 %v1601_v22, %v863_v29  ;;  %v785_v56 = vadd.f32 1.4214138, %v769_v63  ;;  %v750_v7 = vadd.f32 -1.4531521, %v734_v40  ;;  %v1609_v15 = vpop.eup %1608  ;;  %v888_v38 = vsub.f32 0.0, %v872_v21 }
  0xfb   : > { %v951_v61 = vsub.f32 1.0, %v935_v37  ;;  %v793_v25 = vmul.f32 %v2122_v43, %v777_v58  ;;  %v758_v48 = vmul.f32 %v2134_v3, %v742_v47  ;;  %v896_v41 = vsub.f32 0.0, %v880_v6 }
  0xfc   : > { %v959_v31 = vsub.f32 1.0, %v943_v34  ;;  %v801_v12 = vmul.f32 %v2126_v13, %v785_v56  ;;  %v766_v53 = vmul.f32 %v2136_v26, %v750_v7  ;;  %v910_v63 = vmul.f32 1.442695, %v888_v38 }
  0xfd   : > { %v983_v33 = vsub.f32 0.0, %v951_v61  ;;  %v809_v49 = vadd.f32 -0.28449672, %v793_v25  ;;  %v774_v4 = vadd.f32 1.4214138, %v758_v48  ;;  %v1017_v47 = vmul.f32 0.5, %v2073_v62 }
  0xfe   : > { %v991_v17 = vsub.f32 0.0, %v959_v31  ;;  %v817_v44 = vadd.f32 -0.28449672, %v801_v12  ;;  %v782_v14 = vadd.f32 1.4214138, %v766_v53  ;;  %1618 = vpow2.f32 %v910_v63 }
  0xff   : > { %v999_v60 = vsel %vm967_vm9, %v983_v33, %v951_v61  ;;  %v825_v20 = vmul.f32 %v2122_v43, %v809_v49  ;;  %v790_v36 = vmul.f32 %v2134_v3, %v774_v4  ;;  %v2154_v45 = vpop.eup %1610  ;;  %v1025_v4 = vmul.f32 0.5, %v2076_v5 }
 0x100   : > { %v1007_v11 = vsel %vm975_vm10, %v991_v17, %v959_v31  ;;  %v1031_v8 = vadd.f32 1.0, %v999_v60  ;;  %v833_v46 = vmul.f32 %v2126_v13, %v817_v44  ;;  %v798_v28 = vmul.f32 %v2136_v26, %v782_v14  ;;  %v2158_v37 = vpop.eup %1612 }
 0x101   : > { %v1039_v57 = vadd.f32 1.0, %v1007_v11  ;;  %v841_v19 = vadd.f32 0.2548296, %v825_v20  ;;  %v806_v22 = vadd.f32 -0.28449672, %v790_v36  ;;  %v1615_v32 = vpop.eup %1614  ;;  %vm968_vm15 = vcmp.lt.f32.partialorder %v2113_v42, 0.0 }
 0x102   : > { %v1047_v2 = vmul.f32 %v1031_v8, %v1015_v54  ;;  %v849_v23 = vadd.f32 0.2548296, %v833_v46  ;;  %v814_v29 = vadd.f32 -0.28449672, %v798_v28  ;;  %v728_v55 = vmul.f32 1.0614054, %v2154_v45 }
 0x103   : > { %v1055_v50 = vmul.f32 %v1039_v57, %v1023_v9  ;;  %v857_v54 = vmul.f32 %v2122_v43, %v841_v19  ;;  %v822_v24 = vmul.f32 %v2134_v3, %v806_v22  ;;  %v736_v10 = vmul.f32 1.0614054, %v2158_v37  ;;  %v1617_v43 = vpop.eup %1616 }
 0x104   : > { %v865_v9 = vmul.f32 %v2126_v13, %v849_v23  ;;  %v830_v16 = vmul.f32 %v2136_v26, %v814_v29  ;;  %v744_v61 = vadd.f32 -1.4531521, %v728_v55  ;;  %v926_v31 = vmul.f32 1.442695, %v896_v41 }
 0x105   : > { %v1514_v39 = vpack.c.bf16 %v1055_v50, %v1047_v2  ;;  %v937_v35 = vmul.f32 %v1607_v52, %v857_v54  ;;  %v838_v34 = vadd.f32 0.2548296, %v822_v24  ;;  %v752_v13 = vadd.f32 -1.4531521, %v736_v10 }
 0x106   : > { %v945_v0 = vmul.f32 %v1609_v15, %v865_v9  ;;  %v846_v1 = vadd.f32 0.2548296, %v830_v16  ;;  %v760_v56 = vmul.f32 %v2154_v45, %v744_v61  ;;  %1620 = vpow2.f32 %v926_v31 }
 0x107   : > { %1515 = vmatprep.subr.bf16.mxu0 %v1514_v39  ;;  %v953_v40 = vsub.f32 1.0, %v937_v35  ;;  %v854_v18 = vmul.f32 %v2134_v3, %v838_v34  ;;  %v768_v25 = vmul.f32 %v2158_v37, %v752_v13  ;;  %v1014_v50 = vmul.f32 0.5, %v2087_v30 }
 0x108   : > { %v961_v58 = vsub.f32 1.0, %v945_v0  ;;  %v862_v33 = vmul.f32 %v2136_v26, %v846_v1  ;;  %v776_v12 = vadd.f32 1.4214138, %v760_v56  ;;  %v1022_v19 = vmul.f32 0.5, %v2090_v27  ;;  %v1619_v24 = vpop.eup %1618 }
 0x109   : > { %v985_v7 = vsub.f32 0.0, %v953_v40  ;;  %v934_v17 = vmul.f32 %v1615_v32, %v854_v18  ;;  %v784_v52 = vadd.f32 1.4214138, %v768_v25  ;;  %vm976_vm0 = vcmp.lt.f32.partialorder %v2116_v59, 0.0 }
 0x10a   : > { %v993_v48 = vsub.f32 0.0, %v961_v58  ;;  %v942_v60 = vmul.f32 %v1617_v43, %v862_v33  ;;  %v792_v49 = vmul.f32 %v2154_v45, %v776_v12  ;;  %v1016_v0 = vmul.f32 0.5, %v2113_v42  ;;  %v1638_v12 = vld [vmem:[%s1742_s8] sm:$0x77] }
 0x10b   : > { %v1001_v3 = vsel %vm969_vm11, %v985_v7, %v953_v40  ;;  %v950_v53 = vsub.f32 1.0, %v934_v17  ;;  %v800_v44 = vmul.f32 %v2158_v37, %v784_v52  ;;  %vm1398_vm1 = vcmask 1042432  }
 0x10c   : > { %v1009_v11 = vsel %vm977_vm12, %v993_v48, %v961_v58  ;;  %v1033_v26 = vadd.f32 1.0, %v1001_v3  ;;  %v958_v8 = vsub.f32 1.0, %v942_v60  ;;  %v808_v62 = vadd.f32 -0.28449672, %v792_v49 }
 0x10d   : > { %v1041_v15 = vadd.f32 1.0, %v1009_v11  ;;  %v982_v57 = vsub.f32 0.0, %v950_v53  ;;  %v816_v36 = vadd.f32 -0.28449672, %v800_v44  ;;  %vm1399_vm2 = vcmask 849924  }
 0x10e   : > { %v1049_v14 = vmul.f32 %v1033_v26, %v1017_v47  ;;  %v990_v21 = vsub.f32 0.0, %v958_v8  ;;  %v824_v5 = vmul.f32 %v2154_v45, %v808_v62  ;;  %vm1400_vm3 = vmor %vm1399_vm2, %vm1398_vm1 }
 0x10f   : > { %v1057_v2 = vmul.f32 %v1041_v15, %v1025_v4  ;;  %v998_v20 = vsel %vm966_vm13, %v982_v57, %v950_v53  ;;  %v832_v39 = vmul.f32 %v2158_v37, %v816_v36  ;;  %v1639_v15 = vld [vmem:[%s1742_s8 + $0x8] sm:$0x77] }
 0x110   : > { %v1006_v6 = vsel %vm974_vm14, %v990_v21, %v958_v8  ;;  %v1030_v46 = vadd.f32 1.0, %v998_v20  ;;  %v840_v29 = vadd.f32 0.2548296, %v824_v5  ;;  %v1621_v9 = vpop.eup %1620 }
 0x111   : > { %v1518_v28 = vpack.c.bf16 %v1057_v2, %v1049_v14  ;;  %v1038_v22 = vadd.f32 1.0, %v1006_v6  ;;  %v848_v54 = vadd.f32 0.2548296, %v832_v39 }
 0x112   : > { %v1046_v23 = vmul.f32 %v1030_v46, %v1014_v50  ;;  %v856_v41 = vmul.f32 %v2154_v45, %v840_v29 }
 0x113   : > { %1519 = vmatprep.subr.bf16.mxu1 %v1518_v28  ;;  %v1054_v38 = vmul.f32 %v1038_v22, %v1022_v19  ;;  %v864_v30 = vmul.f32 %v2158_v37, %v848_v54  ;;  %v1024_v37 = vmul.f32 0.5, %v2116_v59 }
 0x114   : > { %v936_v55 = vmul.f32 %v1619_v24, %v856_v41 }
 0x115   : > { %v1516_v16 = vpack.c.bf16 %v1054_v38, %v1046_v23  ;;  %v944_v32 = vmul.f32 %v1621_v9, %v864_v30  ;;  %v1640_v23 = vld [vmem:[%s1742_s8 + $0x10] sm:$0x77] }
 0x116   : > { %v952_v35 = vsub.f32 1.0, %v936_v55  ;;  %v1641_v55 = vld [vmem:[%s1742_s8 + $0x18] sm:$0x77] }
 0x117   : > { %1517 = vmatpush1.bf16.msra.mxu0 %v1516_v16  ;;  %v960_v27 = vsub.f32 1.0, %v944_v32 }
 0x118   : > { %v984_v34 = vsub.f32 0.0, %v952_v35 }
 0x119   : > { %v992_v10 = vsub.f32 0.0, %v960_v27 }
 0x11a   : > { %1500 = vmatmul.mubr.msk.f32.vlgmr.msra.gmra.mrb[2].mxu0 %vm1063_vm8, %v2066_v51  ;;  %v1000_v43 = vsel %vm968_vm15, %v984_v34, %v952_v35 }
 0x11b   : > { %v1008_v45 = vsel %vm976_vm0, %v992_v10, %v960_v27  ;;  %v1032_v1 = vadd.f32 1.0, %v1000_v43 }
 0x11c   : > { %v1040_v61 = vadd.f32 1.0, %v1008_v45 }
 0x11d   : > { %v1048_v63 = vmul.f32 %v1032_v1, %v1016_v0 }
 0x11e   : > { %v1056_v40 = vmul.f32 %v1040_v61, %v1024_v37 }
 0x120   : > { %v1520_v18 = vpack.c.bf16 %v1056_v40, %v1048_v63 }
 0x121   : > { %v1061_v13 = vpop.permute.xlu1 %1060 }
 0x122   : > { %1521 = vmatpush1.bf16.msra.mxu1 %v1520_v18 }
 0x125   : > { %1501 = vmatmul.mubr.msk.f32.vlgmr.msra.gmra.mrb[2].mxu1 %vm1063_vm8, %v2066_v51 }
 0x1b4   : > { %v1133_v31 = vpop.f32.mrb[0].mxu0 }
 0x1b5   : > { %v1134_v58 = vadd.f32 %v1133_v31, %v1061_v13  ;;  %v1135_v47 = vpop.f32.mrb[1].mxu0 }
 0x1b6   : > { %v1136_v33 = vadd.f32 %v1135_v47, %v1061_v13 }
 0x1b7   : > { %1622 = vtanh.f32 %v1134_v58 }
 0x1b8   : > { %1624 = vtanh.f32 %v1136_v33 }
 0x1bd   : > { %v1204_v42 = vpop.f32.mrb[0].mxu1 }
 0x1be   : > { %v1205_v56 = vadd.f32 %v1204_v42, %v1061_v13  ;;  %v1206_v59 = vpop.f32.mrb[1].mxu1 }
 0x1bf   : > { %v1207_v7 = vadd.f32 %v1206_v59, %v1061_v13 }
 0x1c0   : > { %1626 = vtanh.f32 %v1205_v56 }
 0x1c1   : > { %v1623_v17 = vpop.eup %1622  ;;  %1628 = vtanh.f32 %v1207_v7 }
 0x1c2   : > { %v1625_v25 = vpop.eup %1624  ;;  %v1359_v48 = vmul.f32 0.05, %v1623_v17 }
 0x1c3   : > { %v1360_v51 = vmul.f32 0.05, %v1625_v25 }
 0x1c5   : > { %v1375_v60 = vcombine.low %v1359_v48, %v1360_v51 }
 0x1c7   : > { %v1383_v3 = vadd.f32 %v1638_v12, %v1375_v60 }
 0x1c9   : > { %v1387_v53 = vmax.f32 %v1383_v3, 0.0 }
 0x1ca   : > { %v1627_v52 = vpop.eup %1626 }
 0x1cb   : > { %v1629_v11 = vpop.eup %1628  ;;  %v1391_v26 = vmin.f32 %v1387_v53, 1.0  ;;  %v1361_v8 = vmul.f32 0.05, %v1627_v52 }
 0x1cc   : > { %v1362_v49 = vmul.f32 0.05, %v1629_v11 }
 0x1cd   : > { %1395 = vst [vmem:[%s2198_s15] sm:$0x77] %v1391_v26 }
 0x1ce   : > { %v1376_v4 = vcombine.low %v1361_v8, %v1362_v49 }
 0x1d0   : > { %v1384_v57 = vadd.f32 %v1639_v15, %v1376_v4 }
 0x1d2   : > { %v1388_v44 = vmax.f32 %v1384_v57, 0.0 }
 0x1d4   : > { %v1392_v14 = vmin.f32 %v1388_v44, 1.0 }
 0x1d6   : > { %1396 = vst [vmem:[%s2198_s15 + $0x8] sm:$0x77] %v1392_v14 }
 0x1ed   : > { %v1275_v21 = vpop.f32.mrb[2].mxu0 }
 0x1ee   : > { %v1276_v62 = vadd.f32 %v1275_v21, %v1061_v13  ;;  %v1277_v2 = vpop.f32.mrb[3].mxu0 }
 0x1ef   : > { %v1278_v20 = vadd.f32 %v1277_v2, %v1061_v13 }
 0x1f0   : > { %1630 = vtanh.f32 %v1276_v62 }
 0x1f1   : > { %1632 = vtanh.f32 %v1278_v20 }
 0x1f8   : > { %v1346_v6 = vpop.f32.mrb[2].mxu1 }
 0x1f9   : > { %v1347_v5 = vadd.f32 %v1346_v6, %v1061_v13  ;;  %v1348_v28 = vpop.f32.mrb[3].mxu1 }
 0x1fa   : > { %v1631_v36 = vpop.eup %1630  ;;  %v1349_v22 = vadd.f32 %v1348_v28, %v1061_v13 }
 0x1fb   : > { %v1633_v50 = vpop.eup %1632  ;;  %v1363_v46 = vmul.f32 0.05, %v1631_v36  ;;  %1634 = vtanh.f32 %v1347_v5 }
 0x1fc   : > { %v1364_v19 = vmul.f32 0.05, %v1633_v50  ;;  %1636 = vtanh.f32 %v1349_v22 }
 0x1fe   : > { %v1377_v39 = vcombine.low %v1363_v46, %v1364_v19 }
 0x200   : > { %v1385_v29 = vadd.f32 %v1640_v23, %v1377_v39 }
 0x202   : > { %v1389_v38 = vmax.f32 %v1385_v29, 0.0 }
 0x204   : > { %v1393_v54 = vmin.f32 %v1389_v38, 1.0 }
 0x205   : > { %v1635_v24 = vpop.eup %1634 }
 0x206   : > { %1397 = vst [vmem:[%s2198_s15 + $0x10] sm:$0x77] %v1393_v54  ;;  %v1637_v41 = vpop.eup %1636  ;;  %v1365_v9 = vmul.f32 0.05, %v1635_v24 }
 0x207   : > { %v1366_v16 = vmul.f32 0.05, %v1637_v41 }
 0x209   : > { %v1378_v30 = vcombine.low %v1365_v9, %v1366_v16 }
 0x20b   : > { %v1386_v32 = vadd.f32 %v1641_v55, %v1378_v30 }
 0x20d   : > { %v1390_v35 = vmax.f32 %v1386_v32, 0.0 }
 0x20f   : > { %v1394_v27 = vmin.f32 %v1390_v35, 1.0 }
 0x211   : > { %1401 = vst.msk [vmem:[%s2198_s15 + $0x18] sm:$0x77] %vm1400_vm3, %v1394_v27 }
 0x212 PF: > { %s15_s20 = sadd.s32 1, %s1664_s20   ;;  %s2236_s18 = smov %s1660_s19 }
 0x213   : > { %p12_p5 = scmp.ge.s32.totalorder %s15_s20, 4   ;;  %s2237_s19 = smov %s2239_s21 }
 0x215   :  { %14 = sbr.rel (!%p12_p5) target bundleno = 2 (0x2), region = 70 }

</bundles_post_ra>
